<compile_context>
chip_gen: v7x
topology: tpu7x:2x2x1
jax: 0.10.0
libtpu: 0.0.40
codegen_flags: <defaults>
</compile_context>

<pallas_src>
import functools

import jax
import jax.numpy as jnp
from jax.experimental import pallas as pl
from jax.experimental.pallas import tpu as pltpu

_EPS = 1e-6
_LANE = 128
_ACC_SUBLANES = 8            # accumulator output block: (1, 8, 128) per core
_MAX_BLOCK_ROWS = 2048       # 2048 x 128 f32 = 1 MiB per block per pipeline buffer
_VMEM_LIMIT = 32 * 1024 * 1024


@functools.lru_cache(maxsize=None)
def _parallel_cores():
    """2 on megacore chips (two TensorCores behind one device), else 1."""
    try:
        kind = jax.devices()[0].device_kind.lower()
    except Exception:  # non-TPU / query failure -> safe default
        return 1
    return 2 if any(t in kind for t in ("v4", "v5p", "v7", "7x")) else 1


def _sublane_multiple(dtype):
    # f32 -> 8, bf16/f16 -> 16, (u)int8 -> 32 sublanes per native tile.
    return max(8, 32 // jnp.dtype(dtype).itemsize)


def _tiling(n, dtypes):
    """Static tile geometry for a flat array of n elements."""
    sub = max(_sublane_multiple(dt) for dt in dtypes)
    rows_data = -(-n // _LANE)
    rows = -(-rows_data // sub) * sub            # ragged tail pad <= sub*128 - 1 elems
    block_rows = min(_MAX_BLOCK_ROWS, rows)      # always a multiple of `sub` (and 8)
    n_blocks = -(-rows // block_rows)
    cores = _parallel_cores()
    nc = cores if (cores > 1 and n_blocks >= 2) else 1
    blocks_per_core = -(-n_blocks // nc)
    return dict(rows=rows, block_rows=block_rows, nc=nc,
                blocks_per_core=blocks_per_core, n_blocks=n_blocks, n_valid=n)


def _to_slab(x, rows):
    """Flatten in native dtype (no upcast); pad only the small ragged tail."""
    flat = x.reshape(-1)
    pad = rows * _LANE - flat.shape[0]
    if pad:
        flat = jnp.pad(flat, (0, pad))
    return flat.reshape(rows, _LANE)


def _partial_sum(block, block_rows):
    """(block_rows, 128) -> (1, 8, 128) via pure vreg adds (no XLU lane reduce)."""
    grouped = block.reshape(block_rows // _ACC_SUBLANES, _ACC_SUBLANES, _LANE)
    return jnp.sum(grouped, axis=0)[None]


def _tail_validity(row_start, block_rows, full_rows, rem_lanes):
    """Element validity for the straddling / phantom block (row-granular, no overflow)."""
    ridx = jax.lax.broadcasted_iota(jnp.int32, (block_rows, _LANE), 0)
    grow = row_start + ridx                      # global row index, fits int32
    valid = grow < full_rows
    if rem_lanes:
        lidx = jax.lax.broadcasted_iota(jnp.int32, (block_rows, _LANE), 1)
        valid = valid | ((grow == full_rows) & (lidx < rem_lanes))
    return valid


def _charbonnier_nomask_kernel(d_ref, s1_ref, *, n_valid, block_rows,
                               blocks_per_core):
    c = pl.program_id(0)
    k = pl.program_id(1)

    @pl.when(k == 0)
    def _():
        s1_ref[...] = jnp.zeros_like(s1_ref)

    d = d_ref[...].astype(jnp.float32)
    val = jnp.sqrt(d * d + jnp.float32(_EPS))

    full_rows = n_valid // _LANE                 # static
    rem_lanes = n_valid % _LANE                  # static
    row_start = (c * blocks_per_core + k) * block_rows

    # Hot path: block entirely inside the valid data.
    @pl.when(row_start + block_rows <= full_rows)
    def _():
        s1_ref[...] += _partial_sum(val, block_rows)

    # Cold path: final straddling block or phantom block past the end.
    @pl.when(row_start + block_rows > full_rows)
    def _():
        valid = _tail_validity(row_start, block_rows, full_rows, rem_lanes)
        s1_ref[...] += _partial_sum(jnp.where(valid, val, 0.0), block_rows)


def _charbonnier_mask_kernel(d_ref, m_ref, s1_ref, s2_ref, *, n_valid,
                             block_rows, blocks_per_core):
    c = pl.program_id(0)
    k = pl.program_id(1)

    @pl.when(k == 0)
    def _():
        s1_ref[...] = jnp.zeros_like(s1_ref)
        s2_ref[...] = jnp.zeros_like(s2_ref)

    d = d_ref[...].astype(jnp.float32)
    m = m_ref[...].astype(jnp.float32)
    val = jnp.sqrt(d * d + jnp.float32(_EPS)) * m

    full_rows = n_valid // _LANE
    rem_lanes = n_valid % _LANE
    row_start = (c * blocks_per_core + k) * block_rows

    @pl.when(row_start + block_rows <= full_rows)
    def _():
        s1_ref[...] += _partial_sum(val, block_rows)
        s2_ref[...] += _partial_sum(m, block_rows)

    @pl.when(row_start + block_rows > full_rows)
    def _():
        valid = _tail_validity(row_start, block_rows, full_rows, rem_lanes)
        # Select (not multiply) so garbage in the OOB region (NaN/Inf) cannot leak.
        s1_ref[...] += _partial_sum(jnp.where(valid, val, 0.0), block_rows)
        s2_ref[...] += _partial_sum(jnp.where(valid, m, 0.0), block_rows)


def _grid_spec(n_inputs, block_rows, nc, blocks_per_core, n_blocks, n_outputs):
    max_blk = n_blocks - 1

    def blk_map(c, k):
        # Clamp phantom blocks (only possible when nc=2 and n_blocks is odd);
        # their contribution is zeroed in-kernel via the validity mask.
        return (jnp.minimum(c * blocks_per_core + k, max_blk), 0)

    in_specs = [pl.BlockSpec((block_rows, _LANE), blk_map) for _ in range(n_inputs)]
    out_spec = pl.BlockSpec((1, _ACC_SUBLANES, _LANE), lambda c, k: (c, 0, 0))
    out_specs = out_spec if n_outputs == 1 else tuple(out_spec for _ in range(n_outputs))
    return pltpu.PrefetchScalarGridSpec(
        num_scalar_prefetch=0,
        grid=(nc, blocks_per_core),
        in_specs=in_specs,
        out_specs=out_specs,
    )


_COMPILER_PARAMS = None


def _compiler_params():
    global _COMPILER_PARAMS
    if _COMPILER_PARAMS is None:
        _COMPILER_PARAMS = pltpu.CompilerParams(
            dimension_semantics=("parallel", "arbitrary"),
            vmem_limit_bytes=_VMEM_LIMIT)
    return _COMPILER_PARAMS


@functools.partial(jax.jit, static_argnames=("rows", "block_rows", "nc",
                                             "blocks_per_core", "n_blocks",
                                             "n_valid"))
def _loss_nomask(diff, *, rows, block_rows, nc, blocks_per_core, n_blocks,
                 n_valid):
    d2 = _to_slab(diff, rows)
    kernel = functools.partial(
        _charbonnier_nomask_kernel, n_valid=n_valid, block_rows=block_rows,
        blocks_per_core=blocks_per_core)

    s1p = pl.pallas_call(
        kernel,
        out_shape=jax.ShapeDtypeStruct((nc, _ACC_SUBLANES, _LANE), jnp.float32),
        grid_spec=_grid_spec(1, block_rows, nc, blocks_per_core, n_blocks, 1),
        compiler_params=_compiler_params(),
    )(d2)

    return jnp.sum(s1p) / jnp.float32(n_valid)


@functools.partial(jax.jit, static_argnames=("rows", "block_rows", "nc",
                                             "blocks_per_core", "n_blocks",
                                             "n_valid"))
def _loss_mask(diff, mask, *, rows, block_rows, nc, blocks_per_core, n_blocks,
               n_valid):
    d2 = _to_slab(diff, rows)
    m2 = _to_slab(mask, rows)
    kernel = functools.partial(
        _charbonnier_mask_kernel, n_valid=n_valid, block_rows=block_rows,
        blocks_per_core=blocks_per_core)

    s1p, s2p = pl.pallas_call(
        kernel,
        out_shape=(
            jax.ShapeDtypeStruct((nc, _ACC_SUBLANES, _LANE), jnp.float32),
            jax.ShapeDtypeStruct((nc, _ACC_SUBLANES, _LANE), jnp.float32),
        ),
        grid_spec=_grid_spec(2, block_rows, nc, blocks_per_core, n_blocks, 2),
        compiler_params=_compiler_params(),
    )(d2, m2)

    n_f = jnp.float32(n_valid)
    return (jnp.sum(s1p) / n_f) / (jnp.sum(s2p) / n_f + jnp.float32(1e-9))


def charbonnier_l1(diff, mask=None):
    """Matches Charbonnier_L1.forward(diff, mask)."""
    diff = jnp.asarray(diff)
    if not jnp.issubdtype(diff.dtype, jnp.floating):
        diff = diff.astype(jnp.float32)
    if mask is None:
        geo = _tiling(diff.size, (diff.dtype,))
        return _loss_nomask(diff, **geo)
    mask = jnp.asarray(mask)
    if not jnp.issubdtype(mask.dtype, jnp.floating):
        mask = mask.astype(jnp.float32)
    geo = _tiling(diff.size, (diff.dtype, mask.dtype))
    return _loss_mask(diff, mask, **geo)


if __name__ == "__main__":
    key = jax.random.PRNGKey(0)
    k1, k2, k3, k4, k5, k6 = jax.random.split(key, 6)

    # --- small canonical shape: (B=2, C=4, H=16, W=16), exact lane fit ---
    diff = jax.random.normal(k1, (2, 4, 16, 16), dtype=jnp.float32)
    mask = (jax.random.uniform(k2, (2, 4, 16, 16)) > 0.5).astype(jnp.float32)

    loss_unmasked = charbonnier_l1(diff)
    jax.block_until_ready(loss_unmasked)
    ref_unmasked = jnp.mean(jnp.sqrt(diff * diff + 1e-6))
    assert jnp.allclose(loss_unmasked, ref_unmasked, rtol=1e-4, atol=1e-6)

    loss_masked = charbonnier_l1(diff, mask)
    jax.block_until_ready(loss_masked)
    ref_masked = jnp.mean(jnp.sqrt(diff * diff + 1e-6) * mask) / (
        jnp.mean(mask) + 1e-9)
    assert jnp.allclose(loss_masked, ref_masked, rtol=1e-4, atol=1e-6)

    # --- ragged size (exercises the in-kernel iota tail mask) ---
    diff_odd = jax.random.normal(k3, (3, 5, 7), dtype=jnp.float32)
    loss_odd = charbonnier_l1(diff_odd)
    jax.block_until_ready(loss_odd)
    ref_odd = jnp.mean(jnp.sqrt(diff_odd * diff_odd + 1e-6))
    assert jnp.allclose(loss_odd, ref_odd, rtol=1e-4, atol=1e-6)

    # --- native bf16 input (no wrapper upcast; cast inside the kernel) ---
    diff_bf = jax.random.normal(k4, (4, 8, 32), dtype=jnp.bfloat16)
    loss_bf = charbonnier_l1(diff_bf)
    jax.block_until_ready(loss_bf)
    d32 = diff_bf.astype(jnp.float32)
    ref_bf = jnp.mean(jnp.sqrt(d32 * d32 + 1e-6))
    assert jnp.allclose(loss_bf, ref_bf, rtol=1e-4, atol=1e-6)

    # --- multi-block ragged case (straddling final block, 2-core split if megacore) ---
    diff_big = jax.random.normal(k5, (8, 3, 97, 130), dtype=jnp.float32)
    mask_big = (jax.random.uniform(k6, (8, 3, 97, 130)) > 0.3).astype(jnp.float32)
    loss_big = charbonnier_l1(diff_big)
    loss_big_m = charbonnier_l1(diff_big, mask_big)
    jax.block_until_ready(loss_big)
    jax.block_until_ready(loss_big_m)
    ref_big = jnp.mean(jnp.sqrt(diff_big * diff_big + 1e-6))
    ref_big_m = jnp.mean(jnp.sqrt(diff_big * diff_big + 1e-6) * mask_big) / (
        jnp.mean(mask_big) + 1e-9)
    assert jnp.allclose(loss_big, ref_big, rtol=1e-4, atol=1e-5)
    assert jnp.allclose(loss_big_m, ref_big_m, rtol=1e-4, atol=1e-5)

    print("KERNEL_OK")
</pallas_src>

<mosaic_0001>
module attributes {stable_mosaic.version = 11 : i64} {
  func.func @_charbonnier_nomask_kernel(%arg0: i32, %arg1: i32, %arg2: memref<16x128xf32, #tpu.memory_space<vmem>>, %arg3: memref<1x8x128xf32, #tpu.memory_space<vmem>>) attributes {dimension_semantics = [#tpu.dimension_semantics<parallel>, #tpu.dimension_semantics<arbitrary>], iteration_bounds = array<i64: 1, 1>, scalar_prefetch = 0 : i64, scratch_operands = 0 : i64, tpu.core_type = #tpu.core_type<tc>, window_params = [{transform_indices = @transform_0, window_bounds = array<i64: 16, 128>}, {transform_indices = @transform_1, window_bounds = array<i64: 1, 8, 128>}]} {
    %c0_i32 = arith.constant 0 : i32
    %0 = arith.cmpi eq, %arg1, %c0_i32 : i32
    %1 = arith.extui %0 : i1 to i32
    %c0_i32_0 = arith.constant 0 : i32
    %2 = arith.cmpi ne, %1, %c0_i32_0 : i32
    scf.if %2 {
      %cst_8 = arith.constant 0.000000e+00 : f32
      %19 = vector.broadcast %cst_8 : f32 to vector<1x8x128xf32>
      %c0_9 = arith.constant 0 : index
      %c0_10 = arith.constant 0 : index
      %c0_11 = arith.constant 0 : index
      %20 = vector.load %arg3[%c0_9, %c0_10, %c0_11] : memref<1x8x128xf32, #tpu.memory_space<vmem>>, vector<1x8x128xf32>
      tpu.vector_store %arg3[%c0_9, %c0_10, %c0_11], %19 {strides = array<i32>} : memref<1x8x128xf32, #tpu.memory_space<vmem>>, vector<1x8x128xf32>,
    } else {
    }
    %c0 = arith.constant 0 : index
    %c0_1 = arith.constant 0 : index
    %3 = vector.load %arg2[%c0, %c0_1] : memref<16x128xf32, #tpu.memory_space<vmem>>, vector<16x128xf32>
    %4 = arith.mulf %3, %3 : vector<16x128xf32>
    %cst = arith.constant 9.99999997E-7 : f32
    %5 = vector.broadcast %cst : f32 to vector<16x128xf32>
    %6 = arith.addf %4, %5 : vector<16x128xf32>
    %7 = math.sqrt %6 : vector<16x128xf32>
    %c1_i32 = arith.constant 1 : i32
    %8 = arith.muli %arg0, %c1_i32 : i32
    %9 = arith.addi %8, %arg1 : i32
    %c16_i32 = arith.constant 16 : i32
    %10 = arith.muli %9, %c16_i32 : i32
    %c16_i32_2 = arith.constant 16 : i32
    %11 = arith.addi %10, %c16_i32_2 : i32
    %c16_i32_3 = arith.constant 16 : i32
    %12 = arith.cmpi sle, %11, %c16_i32_3 : i32
    %13 = arith.extui %12 : i1 to i32
    %c0_i32_4 = arith.constant 0 : i32
    %14 = arith.cmpi ne, %13, %c0_i32_4 : i32
    scf.if %14 {
      %c0_8 = arith.constant 0 : index
      %c0_9 = arith.constant 0 : index
      %c0_10 = arith.constant 0 : index
      %19 = vector.load %arg3[%c0_8, %c0_9, %c0_10] : memref<1x8x128xf32, #tpu.memory_space<vmem>>, vector<1x8x128xf32>
      %20 = vector.shape_cast %7 : vector<16x128xf32> to vector<2x8x128xf32>
      %cst_11 = arith.constant dense<0.000000e+00> : vector<8x128xf32>
      %21 = vector.multi_reduction <add>, %20, %cst_11 [0] : vector<2x8x128xf32> to vector<8x128xf32>
      %22 = vector.shape_cast %21 : vector<8x128xf32> to vector<1x8x128xf32>
      %23 = arith.addf %19, %22 : vector<1x8x128xf32>
      %c0_12 = arith.constant 0 : index
      %c0_13 = arith.constant 0 : index
      %c0_14 = arith.constant 0 : index
      %24 = vector.load %arg3[%c0_12, %c0_13, %c0_14] : memref<1x8x128xf32, #tpu.memory_space<vmem>>, vector<1x8x128xf32>
      tpu.vector_store %arg3[%c0_12, %c0_13, %c0_14], %23 {strides = array<i32>} : memref<1x8x128xf32, #tpu.memory_space<vmem>>, vector<1x8x128xf32>,
    } else {
    }
    %c16_i32_5 = arith.constant 16 : i32
    %15 = arith.addi %10, %c16_i32_5 : i32
    %c16_i32_6 = arith.constant 16 : i32
    %16 = arith.cmpi sgt, %15, %c16_i32_6 : i32
    %17 = arith.extui %16 : i1 to i32
    %c0_i32_7 = arith.constant 0 : i32
    %18 = arith.cmpi ne, %17, %c0_i32_7 : i32
    scf.if %18 {
      %19 = tpu.iota {dimensions = array<i32: 0>} : vector<16x128xi32>
      %20 = vector.broadcast %10 : i32 to vector<16x128xi32>
      %21 = arith.addi %20, %19 : vector<16x128xi32>
      %c16_i32_8 = arith.constant 16 : i32
      %22 = vector.broadcast %c16_i32_8 : i32 to vector<16x128xi32>
      %23 = arith.cmpi slt, %21, %22 : vector<16x128xi32>
      %c0_9 = arith.constant 0 : index
      %c0_10 = arith.constant 0 : index
      %c0_11 = arith.constant 0 : index
      %24 = vector.load %arg3[%c0_9, %c0_10, %c0_11] : memref<1x8x128xf32, #tpu.memory_space<vmem>>, vector<1x8x128xf32>
      %cst_12 = arith.constant 0.000000e+00 : f32
      %25 = vector.broadcast %cst_12 : f32 to vector<16x128xf32>
      %26 = arith.select %23, %7, %25 : vector<16x128xi1>, vector<16x128xf32>
      %27 = vector.shape_cast %26 : vector<16x128xf32> to vector<2x8x128xf32>
      %cst_13 = arith.constant dense<0.000000e+00> : vector<8x128xf32>
      %28 = vector.multi_reduction <add>, %27, %cst_13 [0] : vector<2x8x128xf32> to vector<8x128xf32>
      %29 = vector.shape_cast %28 : vector<8x128xf32> to vector<1x8x128xf32>
      %30 = arith.addf %24, %29 : vector<1x8x128xf32>
      %c0_14 = arith.constant 0 : index
      %c0_15 = arith.constant 0 : index
      %c0_16 = arith.constant 0 : index
      %31 = vector.load %arg3[%c0_14, %c0_15, %c0_16] : memref<1x8x128xf32, #tpu.memory_space<vmem>>, vector<1x8x128xf32>
      tpu.vector_store %arg3[%c0_14, %c0_15, %c0_16], %30 {strides = array<i32>} : memref<1x8x128xf32, #tpu.memory_space<vmem>>, vector<1x8x128xf32>,
    } else {
    }
    return
  }
  func.func @transform_0(%arg0: i32, %arg1: i32) -> (i32, i32) {
    %c1_i32 = arith.constant 1 : i32
    %0 = arith.muli %arg0, %c1_i32 : i32
    %1 = arith.addi %0, %arg1 : i32
    %c0_i32 = arith.constant 0 : i32
    %2 = arith.minsi %1, %c0_i32 : i32
    %c0_i32_0 = arith.constant 0 : i32
    %c0_i32_1 = arith.constant 0 : i32
    return %2, %c0_i32_0 : i32, i32
  }
  func.func @transform_1(%arg0: i32, %arg1: i32) -> (i32, i32, i32) {
    %c0_i32 = arith.constant 0 : i32
    %c0_i32_0 = arith.constant 0 : i32
    %c0_i32_1 = arith.constant 0 : i32
    return %arg0, %c0_i32, %c0_i32_0 : i32, i32, i32
  }
}

</mosaic_0001>

<bundles_post_ra>
// kernel: _loss_nomask.1
= control target key start
LH: loop header
LB: loop body
LE: loop exit
PB: predicated region body
PF: predicated region fallthrough
CT: control target
= control target key end

     0   :  { %s128_s0 = inlined_call_operand.vmem [shape: f32[16,128], index: 0, kind: input, shape index: {}]   ;;  %s129_s1 = inlined_call_operand.vmem [shape: f32[1,8,128], index: 1, kind: output, shape index: {}]  }
   0x1   :  { %v45_v0 = vld [vmem:[%s128_s0] sm:$0xff]  ;;  %v46_v1 = vld [vmem:[%s128_s0 + $0x8] sm:$0xff] }
   0x2   :  { %v47_v2 = vmul.f32 %v45_v0, %v45_v0  ;;  %v48_v3 = vmul.f32 %v46_v1, %v46_v1 }
   0x4   :  { %v49_v4 = vadd.f32 1e-06, %v47_v2  ;;  %v50_v5 = vadd.f32 1e-06, %v48_v3 }
   0x6   :  { %105 = vrsqrt.f32 %v49_v4  ;;  %vm53_vm0 = vcmp.eq.f32.partialorder %v49_v4, inf  ;;  %v56_v7 = vand.u32 2147483648, %v49_v4  ;;  %vm55_vm1 = vcmp.eq.f32.partialorder %v49_v4, 0.0 }
   0x7   :  { %107 = vrsqrt.f32 %v50_v5  ;;  %vm60_vm2 = vcmp.eq.f32.partialorder %v50_v5, inf  ;;  %v63_v10 = vand.u32 2147483648, %v50_v5  ;;  %vm62_vm3 = vcmp.eq.f32.partialorder %v50_v5, 0.0 }
  0x10   :  { %v106_v6 = vpop.eup %105 }
  0x11   :  { %v108_v8 = vpop.eup %107  ;;  %v52_v9 = vmul.f32 %v106_v6, %v49_v4 }
  0x12   :  { %v59_v11 = vmul.f32 %v108_v8, %v50_v5 }
  0x13   :  { %v54_v12 = vsel %vm53_vm0, %v49_v4, %v52_v9 }
  0x14   :  { %v57_v13 = vsel %vm55_vm1, %v56_v7, %v54_v12  ;;  %v61_v14 = vsel %vm60_vm2, %v50_v5, %v59_v11 }
  0x15   :  { %v64_v15 = vsel %vm62_vm3, %v63_v10, %v61_v14 }
  0x16   :  { %v73_v16 = vadd.f32 %v64_v15, %v57_v13 }
  0x18   :  { %75 = vst [vmem:[%s129_s1] sm:$0xff] %v73_v16 }

</bundles_post_ra>
